<compile_context>
chip_gen: v5e
topology: v5e:2x2
jax: 0.10.0
libtpu: 0.0.40
codegen_flags: <defaults>
</compile_context>

<pallas_src>
import functools

import jax
import jax.numpy as jnp
from jax.experimental import pallas as pl
from jax.experimental.pallas import tpu as pltpu


# ---------------------------------------------------------------------------
# Kernel 1: global average pool. x viewed as (N*C, H*W); each row -> its mean.
# ---------------------------------------------------------------------------
def _pool_kernel(x_ref, o_ref, *, inv_hw):
    x = x_ref[...].astype(jnp.float32)
    o_ref[...] = jnp.sum(x, axis=-1, keepdims=True) * inv_hw


# ---------------------------------------------------------------------------
# Kernel 2: tiny fused FC stack on the pooled tensor (single grid point).
#   scales = hsigmoid(relu(pooled @ w1t + b1) @ w2t + b2)
# ---------------------------------------------------------------------------
def _se_scales_kernel(p_ref, w1t_ref, b1_ref, w2t_ref, b2_ref, o_ref):
    p = p_ref[...]                                                     # (N, C)
    s = jnp.dot(p, w1t_ref[...], preferred_element_type=jnp.float32) + b1_ref[...]
    s = jnp.maximum(s, 0.0)                                            # ReLU
    e = jnp.dot(s, w2t_ref[...], preferred_element_type=jnp.float32) + b2_ref[...]
    # HSigmoid: relu6(e + 3) / 6
    o_ref[...] = jnp.minimum(jnp.maximum(e + 3.0, 0.0), 6.0) * (1.0 / 6.0)


# ---------------------------------------------------------------------------
# Kernel 3: fused rescale. out[row, :] = x[row, :] * scale[row]
# ---------------------------------------------------------------------------
def _scale_kernel(x_ref, s_ref, o_ref):
    o_ref[...] = (x_ref[...].astype(jnp.float32) * s_ref[...]).astype(o_ref.dtype)


def _row_tile(n_rows, row_bytes, itemsize, target_bytes=2 << 20):
    """Row tile: multiple of the packed sublane count, x-block ~target_bytes."""
    pack = max(8, 32 // itemsize)          # 8 rows f32, 16 bf16, 32 int8
    if n_rows <= pack or n_rows % pack != 0:
        return int(n_rows)                 # full-dim block is always legal
    tr = max(pack, (target_bytes // row_bytes) // pack * pack)
    return int(min(tr, n_rows))
    # TODO(synk): for very large H*W (row_bytes >> target) add a spatial grid
    # axis with accumulation instead of an 8-row full-spatial block.


def se_module(x, w1, b1, w2, b2):
    """SEModule forward.  x: (N,C,H,W); w1: (C/r, C); b1: (C/r,); w2: (C, C/r); b2: (C,)."""
    N, C, H, W = x.shape
    Cr = w1.shape[0]
    HW = H * W
    NC = N * C
    itemsize = jnp.dtype(x.dtype).itemsize

    x2 = x.reshape(NC, HW)                      # free: contiguous row-major view
    tr = _row_tile(NC, HW * itemsize, itemsize)

    # ---- 1. global average pool -> per-(n,c) mean -------------------------
    pooled = pl.pallas_call(
        functools.partial(_pool_kernel, inv_hw=1.0 / HW),
        out_shape=jax.ShapeDtypeStruct((NC, 1), jnp.float32),
        grid_spec=pltpu.PrefetchScalarGridSpec(
            num_scalar_prefetch=0,
            grid=(pl.cdiv(NC, tr),),
            in_specs=[pl.BlockSpec((tr, HW), lambda i: (i, 0))],
            out_specs=pl.BlockSpec((tr, 1), lambda i: (i, 0)),
        ),
        compiler_params=pltpu.CompilerParams(dimension_semantics=("parallel",)),
    )(x2)

    # ---- 2. squeeze FC + ReLU + excite FC + HSigmoid (tiny) ----------------
    scales = pl.pallas_call(
        _se_scales_kernel,
        out_shape=jax.ShapeDtypeStruct((N, C), jnp.float32),
    )(
        pooled.reshape(N, C),
        jnp.transpose(w1).astype(jnp.float32),      # (C, Cr)
        b1.reshape(1, Cr).astype(jnp.float32),
        jnp.transpose(w2).astype(jnp.float32),      # (Cr, C)
        b2.reshape(1, C).astype(jnp.float32),
    )

    # ---- 3. fused channel-wise rescale of the activation ------------------
    out2 = pl.pallas_call(
        _scale_kernel,
        out_shape=jax.ShapeDtypeStruct((NC, HW), x.dtype),
        grid_spec=pltpu.PrefetchScalarGridSpec(
            num_scalar_prefetch=0,
            grid=(pl.cdiv(NC, tr),),
            in_specs=[pl.BlockSpec((tr, HW), lambda i: (i, 0)),
                      pl.BlockSpec((tr, 1), lambda i: (i, 0))],
            out_specs=pl.BlockSpec((tr, HW), lambda i: (i, 0)),
        ),
        compiler_params=pltpu.CompilerParams(dimension_semantics=("parallel",)),
    )(x2, scales.reshape(NC, 1))

    return out2.reshape(N, C, H, W)


if __name__ == "__main__":
    key = jax.random.PRNGKey(0)
    k_x, k_w1, k_b1, k_w2, k_b2 = jax.random.split(key, 5)

    N, C, H, W = 2, 16, 16, 16
    reduction = 4
    Cr = C // reduction

    x = jax.random.normal(k_x, (N, C, H, W), dtype=jnp.float32)
    w1 = jax.random.normal(k_w1, (Cr, C), dtype=jnp.float32) * (C ** -0.5)
    b1 = jax.random.normal(k_b1, (Cr,), dtype=jnp.float32) * 0.1
    w2 = jax.random.normal(k_w2, (C, Cr), dtype=jnp.float32) * (Cr ** -0.5)
    b2 = jax.random.normal(k_b2, (C,), dtype=jnp.float32) * 0.1

    out = se_module(x, w1, b1, w2, b2)
    out = jax.block_until_ready(out)

    # Pure-JAX reference (same math as the PyTorch SEModule forward).
    pooled_ref = x.mean(axis=(2, 3))                       # (N, C)
    s_ref = jnp.maximum(pooled_ref @ w1.T + b1, 0.0)       # squeeze + ReLU
    e_ref = s_ref @ w2.T + b2                              # excite
    hs_ref = jnp.clip(e_ref + 3.0, 0.0, 6.0) / 6.0         # HSigmoid
    ref = x * hs_ref[:, :, None, None]

    assert out.shape == x.shape and out.dtype == x.dtype
    assert jnp.allclose(out, ref, atol=1e-5, rtol=1e-5), (
        f"max abs err {jnp.max(jnp.abs(out - ref))}")

    print("KERNEL_OK")
</pallas_src>

<mosaic_0001>
module attributes {stable_mosaic.version = 11 : i64} {
  func.func @_pool_kernel(%arg0: i32, %arg1: memref<32x256xf32, #tpu.memory_space<vmem>>, %arg2: memref<32x1xf32, #tpu.memory_space<vmem>>) attributes {dimension_semantics = [#tpu.dimension_semantics<parallel>], iteration_bounds = array<i64: 1>, scalar_prefetch = 0 : i64, scratch_operands = 0 : i64, tpu.core_type = #tpu.core_type<tc>, window_params = [{transform_indices = @transform_0, window_bounds = array<i64: 32, 256>}, {transform_indices = @transform_1, window_bounds = array<i64: 32, 1>}]} {
    %c0 = arith.constant 0 : index
    %c0_0 = arith.constant 0 : index
    %0 = vector.load %arg1[%c0, %c0_0] : memref<32x256xf32, #tpu.memory_space<vmem>>, vector<32x256xf32>
    %cst = arith.constant dense<0.000000e+00> : vector<32xf32>
    %1 = vector.multi_reduction <add>, %0, %cst [1] : vector<32x256xf32> to vector<32xf32>
    %2 = vector.shape_cast %1 : vector<32xf32> to vector<32x1xf32>
    %cst_1 = arith.constant 3.906250e-03 : f32
    %3 = vector.broadcast %cst_1 : f32 to vector<32x1xf32>
    %4 = arith.mulf %2, %3 : vector<32x1xf32>
    %c0_2 = arith.constant 0 : index
    %c0_3 = arith.constant 0 : index
    %5 = vector.load %arg2[%c0_2, %c0_3] : memref<32x1xf32, #tpu.memory_space<vmem>>, vector<32x1xf32>
    tpu.vector_store %arg2[%c0_2, %c0_3], %4 {strides = array<i32>} : memref<32x1xf32, #tpu.memory_space<vmem>>, vector<32x1xf32>,
    return
  }
  func.func @transform_0(%arg0: i32) -> (i32, i32) {
    %c0_i32 = arith.constant 0 : i32
    %c0_i32_0 = arith.constant 0 : i32
    return %arg0, %c0_i32 : i32, i32
  }
  func.func @transform_1(%arg0: i32) -> (i32, i32) {
    %c0_i32 = arith.constant 0 : i32
    %c0_i32_0 = arith.constant 0 : i32
    return %arg0, %c0_i32 : i32, i32
  }
}

</mosaic_0001>

<bundles_post_ra>
// kernel: tpu_custom_call.1
= control target key start
LH: loop header
LB: loop body
LE: loop exit
PB: predicated region body
PF: predicated region fallthrough
CT: control target
= control target key end

     0   :  { %6 = vsyncpa [#allocation3], 0  ;;  %s87_s9 = smov [#allocation2]   ;;  %s88_s11 = smov 256   ;;  %s115_s0 = inlined_call_operand.hbm [shape: f32[32,256], index: 0, kind: input, shape index: {}]   ;;  %s116_s1 = inlined_call_operand.vmem [shape: f32[32,1], index: 1, kind: output, shape index: {}]  }
   0x1   :  { %s11_s8 = sshll.u32 %s115_s0, 4  ;;  %s13_s10 = sshll.u32 %s87_s9, 4  ;;  %s12_s8 = int_to_ptr.hbm [resolvable:$true] %s11_s8  ;;  %s14_s10 = int_to_ptr.vmem [resolvable:$true] %s13_s10 }
   0x2   :  { %s89_s12 = smov 16  }
   0x3   :  { %19 = dma.hbm_to_vmem [thread:$0]  %s12_s8, 1024, %s14_s10, [#allocation3], %s88_s11, %s88_s11, %s89_s12  }
   0x4   :  { %85 = dma.done.wait [#allocation3], 1024  }
   0x5   :  { %86 = vsyncadd [#allocation3], 4294966272  ;;  %v28_v0 = vld [vmem:[#allocation2 + $0x20] sm:$0xff]  ;;  %v29_v1 = vld [vmem:[#allocation2 + $0x28] sm:$0xff]  ;;  %vm48_vm0 = vcmask 7168  }
   0x6   :  { %v24_v2 = vld [vmem:[#allocation2] sm:$0xff]  ;;  %v38_v3 = vadd.f32 %v29_v1, %v28_v0  ;;  %v25_v4 = vld [vmem:[#allocation2 + $0x8] sm:$0xff]  ;;  %v30_v6 = vld [vmem:[#allocation2 + $0x30] sm:$0xff] }
   0x7   :  { %v32_v5 = vadd.f32 %v25_v4, %v24_v2  ;;  %v31_v7 = vld [vmem:[#allocation2 + $0x38] sm:$0xff]  ;;  %v26_v8 = vld [vmem:[#allocation2 + $0x10] sm:$0xff] }
   0x8   :  { %39 = vadd.xlane.f32.xlu1 %v38_v3  ;;  %v27_v9 = vld [vmem:[#allocation2 + $0x18] sm:$0xff]  ;;  %v41_v10 = vadd.f32 %v31_v7, %v30_v6 }
   0x9   :  { %33 = vadd.xlane.f32.xlu0 %v32_v5  ;;  %v35_v11 = vadd.f32 %v27_v9, %v26_v8 }
  0x10   :  { %42 = vadd.xlane.f32.xlu1 %v41_v10 }
  0x11   :  { %36 = vadd.xlane.f32.xlu0 %v35_v11 }
  0x7b   :  { %v40_v12 = vpop.xlane.xlu1 %39 }
  0x7c   :  { %v46_v13 = vmul.f32 0.00390625, %v40_v12  ;;  %v34_v14 = vpop.xlane.xlu0 %33 }
  0x7d   :  { %v44_v15 = vmul.f32 0.00390625, %v34_v14 }
  0x7e   :  { %51 = vst.msk [vmem:[%s116_s1 + $0x10] sm:$0xff] %vm48_vm0, %v46_v13 }
  0x7f   :  { %49 = vst.msk [vmem:[%s116_s1] sm:$0xff] %vm48_vm0, %v44_v15 }
  0x83   :  { %v43_v16 = vpop.xlane.xlu1 %42 }
  0x84   :  { %v47_v17 = vmul.f32 0.00390625, %v43_v16  ;;  %v37_v18 = vpop.xlane.xlu0 %36 }
  0x85   :  { %v45_v19 = vmul.f32 0.00390625, %v37_v18 }
  0x86   :  { %52 = vst.msk [vmem:[%s116_s1 + $0x18] sm:$0xff] %vm48_vm0, %v47_v17 }
  0x87   :  { %50 = vst.msk [vmem:[%s116_s1 + $0x8] sm:$0xff] %vm48_vm0, %v45_v19 }
  0x88   :  { %57 = vsyncpa [#allocation3], 1 }

</bundles_post_ra>
